<compile_context>
chip_gen: v5e
topology: v5e:2x2
jax: 0.10.0
libtpu: 0.0.40
codegen_flags: <defaults>
</compile_context>

<pallas_src>
import functools

import numpy as np
import jax
import jax.numpy as jnp
from jax.experimental import pallas as pl
from jax.experimental.pallas import tpu as pltpu


# --------------------------------------------------------------------------
# Kernel bodies (rows on sublanes, N / K on lanes; blocks are contiguous in
# HBM because N and K are the full last dims).
# --------------------------------------------------------------------------
def _symmetric_kernel_dense(x_ref, o_ref, *, N):
    """One dense load, value-level mirror build, ONE dense store per tile."""
    x = x_ref[...]                                   # (TR, N)
    # mirrored half: columns N-2, N-3, ..., 0 (static slices, bit-exact)
    mirror = [x[:, j:j + 1] for j in range(N - 2, -1, -1)]
    o_ref[...] = jnp.concatenate([x] + mirror, axis=-1)     # (TR, 2N-1)


def _symmetric_kernel_safe(x_ref, o_ref, *, N):
    """Conservative fallback body: static column-slice ref copies only."""
    o_ref[:, 0:N] = x_ref[...]
    for j in range(N - 1):
        src = N - 2 - j
        o_ref[:, N + j:N + j + 1] = x_ref[:, src:src + 1]


def _symmetric_reference(X):
    """Pure-JAX reference mirroring the PyTorch forward exactly."""
    return jnp.concatenate([X, jnp.flip(X[..., :-1], axis=-1)], axis=-1)


# --------------------------------------------------------------------------
# pallas_call builder (shared by the probe and the main path)
# --------------------------------------------------------------------------
def _pallas_symmetric(x2d, *, N, tr, dense):
    R = x2d.shape[0]
    K = 2 * N - 1
    itemsize = jnp.dtype(x2d.dtype).itemsize
    kern = _symmetric_kernel_dense if dense else _symmetric_kernel_safe
    return pl.pallas_call(
        functools.partial(kern, N=N),
        out_shape=jax.ShapeDtypeStruct((R, K), x2d.dtype),
        grid=(pl.cdiv(R, tr),),
        in_specs=[pl.BlockSpec((tr, N), lambda i: (i, 0))],
        out_specs=pl.BlockSpec((tr, K), lambda i: (i, 0)),
        compiler_params=pltpu.CompilerParams(
            dimension_semantics=("parallel",),        # megacore sharding (v7x)
            vmem_limit_bytes=32 * 1024 * 1024),       # explicit: v5e default is 16 MiB
        cost_estimate=pl.CostEstimate(
            flops=0, transcendentals=0,
            bytes_accessed=R * (N + K) * itemsize),
    )(x2d)


@functools.lru_cache(maxsize=None)
def _dense_body_supported(N, dtype_name):
    """One-time tiny probe: does the dense (concat) body lower and match?"""
    try:
        dtype = jnp.dtype(dtype_name)
        x = jnp.arange(8 * N, dtype=jnp.float32).astype(dtype).reshape(8, N)
        y = jax.block_until_ready(_pallas_symmetric(x, N=N, tr=8, dense=True))
        return bool(jnp.array_equal(y, _symmetric_reference(x)))
    except Exception:
        return False


# --------------------------------------------------------------------------
# Public wrapper: Symmetric(kernel_size).forward(X)
# --------------------------------------------------------------------------
def symmetric_forward(X, *, row_tile=8192, min_pallas_rows=16384):
    """Pallas-backed equivalent of Symmetric(kernel_size).forward(X).

    X: (..., N) with N = kernel_size // 2 + 1.  Returns (..., 2N - 1).
    Small inputs (R < min_pallas_rows rows) use the fused XLA path, which wins
    when kernel launch / pipeline overhead dominates.
    """
    N = int(X.shape[-1])
    K = 2 * N - 1
    lead = X.shape[:-1]
    R = 1
    for d in lead:
        R *= int(d)

    if N < 2 or R < 8 or R < min_pallas_rows:
        return _symmetric_reference(X)

    itemsize = jnp.dtype(X.dtype).itemsize
    r8 = ((R + 7) // 8) * 8                 # sublane-rounded row count

    TR = min(int(row_tile), r8)
    # VMEM cap: in + out blocks, double-buffered, lanes padded to 128
    #   bytes = 2(bufs) * 2(arrays) * TR * 128 * itemsize  <= ~24 MiB
    vmem_row_cap = (24 * 1024 * 1024) // (4 * 128 * itemsize)
    TR = min(TR, vmem_row_cap)
    # Keep >= 4 grid blocks on large inputs so the parallel row axis can
    # shard across both TensorCores on v7x (irrelevant on v5e/v6e).
    if R >= 4 * 2048:
        TR = min(TR, ((pl.cdiv(R, 4) + 7) // 8) * 8)
    TR = max(8, (TR // 8) * 8)

    dense = _dense_body_supported(N, jnp.dtype(X.dtype).name)

    x2d = X.reshape(R, N)                   # free view: no transpose, no copy
    out = _pallas_symmetric(x2d, N=N, tr=TR, dense=dense)
    return out.reshape(lead + (K,))


if __name__ == "__main__":
    kernel_size = 15                        # odd conv kernel -> N = 8, K = 15
    N = kernel_size // 2 + 1

    key = jax.random.PRNGKey(0)
    k0, k1, k2 = jax.random.split(key, 3)

    # 1) Typical use: conv1d weight parametrization (out_ch, in_ch, N).
    #    R = 8 rows -> default path falls back to the fused XLA reference.
    w = jax.random.normal(k0, (4, 2, N), dtype=jnp.float32)
    y_ref = _symmetric_reference(w)
    y = jax.block_until_ready(symmetric_forward(w))
    np.testing.assert_array_equal(np.asarray(y), np.asarray(y_ref))
    assert y.shape == (4, 2, kernel_size)

    # 2) Same tiny input forced through the Pallas path (single block).
    y = jax.block_until_ready(symmetric_forward(w, min_pallas_rows=0))
    np.testing.assert_array_equal(np.asarray(y), np.asarray(y_ref))

    # 3) Multi-block + ragged tail: R = 300 rows with a 128-row tile -> grid
    #    of 3 with a partial final block (masked edge writeback, no pad/slice).
    x2 = jax.random.normal(k1, (3, 100, N), dtype=jnp.float32)
    y2 = jax.block_until_ready(
        symmetric_forward(x2, row_tile=128, min_pallas_rows=0))
    np.testing.assert_array_equal(np.asarray(y2),
                                  np.asarray(_symmetric_reference(x2)))

    # 4) bf16 path (different sublane packing / masked-store lowering);
    #    the op is a pure copy so the result must be bit-exact.
    x3 = jax.random.normal(k2, (16, 32, N), dtype=jnp.float32).astype(jnp.bfloat16)
    y3 = jax.block_until_ready(symmetric_forward(x3, min_pallas_rows=0))
    assert bool(jnp.array_equal(y3, _symmetric_reference(x3)))

    print("KERNEL_OK")
</pallas_src>

<mosaic_0001>
module attributes {stable_mosaic.version = 11 : i64} {
  func.func @_symmetric_kernel_dense(%arg0: i32, %arg1: memref<8x8xf32, #tpu.memory_space<vmem>>, %arg2: memref<8x15xf32, #tpu.memory_space<vmem>>) attributes {dimension_semantics = [#tpu.dimension_semantics<parallel>], iteration_bounds = array<i64: 1>, scalar_prefetch = 0 : i64, scratch_operands = 0 : i64, tpu.core_type = #tpu.core_type<tc>, window_params = [{transform_indices = @transform_0, window_bounds = array<i64: 8, 8>}, {transform_indices = @transform_1, window_bounds = array<i64: 8, 15>}]} {
    %c0 = arith.constant 0 : index
    %c0_0 = arith.constant 0 : index
    %0 = vector.load %arg1[%c0, %c0_0] : memref<8x8xf32, #tpu.memory_space<vmem>>, vector<8x8xf32>
    %1 = vector.extract_strided_slice %0 {offsets = [0, 6], sizes = [8, 1], strides = [1, 1]} : vector<8x8xf32> to vector<8x1xf32>
    %2 = vector.extract_strided_slice %0 {offsets = [0, 5], sizes = [8, 1], strides = [1, 1]} : vector<8x8xf32> to vector<8x1xf32>
    %3 = vector.extract_strided_slice %0 {offsets = [0, 4], sizes = [8, 1], strides = [1, 1]} : vector<8x8xf32> to vector<8x1xf32>
    %4 = vector.extract_strided_slice %0 {offsets = [0, 3], sizes = [8, 1], strides = [1, 1]} : vector<8x8xf32> to vector<8x1xf32>
    %5 = vector.extract_strided_slice %0 {offsets = [0, 2], sizes = [8, 1], strides = [1, 1]} : vector<8x8xf32> to vector<8x1xf32>
    %6 = vector.extract_strided_slice %0 {offsets = [0, 1], sizes = [8, 1], strides = [1, 1]} : vector<8x8xf32> to vector<8x1xf32>
    %7 = vector.extract_strided_slice %0 {offsets = [0, 0], sizes = [8, 1], strides = [1, 1]} : vector<8x8xf32> to vector<8x1xf32>
    %8 = tpu.concatenate %0, %1, %2, %3, %4, %5, %6, %7 in 1 : vector<8x8xf32>, vector<8x1xf32>, vector<8x1xf32>, vector<8x1xf32>, vector<8x1xf32>, vector<8x1xf32>, vector<8x1xf32>, vector<8x1xf32> -> vector<8x15xf32>
    %c0_1 = arith.constant 0 : index
    %c0_2 = arith.constant 0 : index
    %9 = vector.load %arg2[%c0_1, %c0_2] : memref<8x15xf32, #tpu.memory_space<vmem>>, vector<8x15xf32>
    tpu.vector_store %arg2[%c0_1, %c0_2], %8 {strides = array<i32>} : memref<8x15xf32, #tpu.memory_space<vmem>>, vector<8x15xf32>,
    return
  }
  func.func @transform_0(%arg0: i32) -> (i32, i32) {
    %c0_i32 = arith.constant 0 : i32
    %c0_i32_0 = arith.constant 0 : i32
    return %arg0, %c0_i32 : i32, i32
  }
  func.func @transform_1(%arg0: i32) -> (i32, i32) {
    %c0_i32 = arith.constant 0 : i32
    %c0_i32_0 = arith.constant 0 : i32
    return %arg0, %c0_i32 : i32, i32
  }
}

module attributes {stable_mosaic.version = 11 : i64} {
  func.func @_symmetric_kernel_safe(%arg0: i32, %arg1: memref<8x8xf32, #tpu.memory_space<vmem>>, %arg2: memref<8x15xf32, #tpu.memory_space<vmem>>) attributes {dimension_semantics = [#tpu.dimension_semantics<parallel>], iteration_bounds = array<i64: 1>, scalar_prefetch = 0 : i64, scratch_operands = 0 : i64, tpu.core_type = #tpu.core_type<tc>, window_params = [{transform_indices = @transform_0, window_bounds = array<i64: 8, 8>}, {transform_indices = @transform_1, window_bounds = array<i64: 8, 15>}]} {
    %c0 = arith.constant 0 : index
    %c0_0 = arith.constant 0 : index
    %0 = vector.load %arg1[%c0, %c0_0] : memref<8x8xf32, #tpu.memory_space<vmem>>, vector<8x8xf32>
    %c0_1 = arith.constant 0 : index
    %c0_2 = arith.constant 0 : index
    %1 = vector.load %arg2[%c0_1, %c0_2] : memref<8x15xf32, #tpu.memory_space<vmem>>, vector<8x8xf32>
    tpu.vector_store %arg2[%c0_1, %c0_2], %0 {strides = array<i32>} : memref<8x15xf32, #tpu.memory_space<vmem>>, vector<8x8xf32>,
    %c0_3 = arith.constant 0 : index
    %c6 = arith.constant 6 : index
    %2 = vector.load %arg1[%c0_3, %c6] : memref<8x8xf32, #tpu.memory_space<vmem>>, vector<8x1xf32>
    %c0_4 = arith.constant 0 : index
    %c8 = arith.constant 8 : index
    %3 = vector.load %arg2[%c0_4, %c8] : memref<8x15xf32, #tpu.memory_space<vmem>>, vector<8x1xf32>
    tpu.vector_store %arg2[%c0_4, %c8], %2 {strides = array<i32>} : memref<8x15xf32, #tpu.memory_space<vmem>>, vector<8x1xf32>,
    %c0_5 = arith.constant 0 : index
    %c5 = arith.constant 5 : index
    %4 = vector.load %arg1[%c0_5, %c5] : memref<8x8xf32, #tpu.memory_space<vmem>>, vector<8x1xf32>
    %c0_6 = arith.constant 0 : index
    %c9 = arith.constant 9 : index
    %5 = vector.load %arg2[%c0_6, %c9] : memref<8x15xf32, #tpu.memory_space<vmem>>, vector<8x1xf32>
    tpu.vector_store %arg2[%c0_6, %c9], %4 {strides = array<i32>} : memref<8x15xf32, #tpu.memory_space<vmem>>, vector<8x1xf32>,
    %c0_7 = arith.constant 0 : index
    %c4 = arith.constant 4 : index
    %6 = vector.load %arg1[%c0_7, %c4] : memref<8x8xf32, #tpu.memory_space<vmem>>, vector<8x1xf32>
    %c0_8 = arith.constant 0 : index
    %c10 = arith.constant 10 : index
    %7 = vector.load %arg2[%c0_8, %c10] : memref<8x15xf32, #tpu.memory_space<vmem>>, vector<8x1xf32>
    tpu.vector_store %arg2[%c0_8, %c10], %6 {strides = array<i32>} : memref<8x15xf32, #tpu.memory_space<vmem>>, vector<8x1xf32>,
    %c0_9 = arith.constant 0 : index
    %c3 = arith.constant 3 : index
    %8 = vector.load %arg1[%c0_9, %c3] : memref<8x8xf32, #tpu.memory_space<vmem>>, vector<8x1xf32>
    %c0_10 = arith.constant 0 : index
    %c11 = arith.constant 11 : index
    %9 = vector.load %arg2[%c0_10, %c11] : memref<8x15xf32, #tpu.memory_space<vmem>>, vector<8x1xf32>
    tpu.vector_store %arg2[%c0_10, %c11], %8 {strides = array<i32>} : memref<8x15xf32, #tpu.memory_space<vmem>>, vector<8x1xf32>,
    %c0_11 = arith.constant 0 : index
    %c2 = arith.constant 2 : index
    %10 = vector.load %arg1[%c0_11, %c2] : memref<8x8xf32, #tpu.memory_space<vmem>>, vector<8x1xf32>
    %c0_12 = arith.constant 0 : index
    %c12 = arith.constant 12 : index
    %11 = vector.load %arg2[%c0_12, %c12] : memref<8x15xf32, #tpu.memory_space<vmem>>, vector<8x1xf32>
    tpu.vector_store %arg2[%c0_12, %c12], %10 {strides = array<i32>} : memref<8x15xf32, #tpu.memory_space<vmem>>, vector<8x1xf32>,
    %c0_13 = arith.constant 0 : index
    %c1 = arith.constant 1 : index
    %12 = vector.load %arg1[%c0_13, %c1] : memref<8x8xf32, #tpu.memory_space<vmem>>, vector<8x1xf32>
    %c0_14 = arith.constant 0 : index
    %c13 = arith.constant 13 : index
    %13 = vector.load %arg2[%c0_14, %c13] : memref<8x15xf32, #tpu.memory_space<vmem>>, vector<8x1xf32>
    tpu.vector_store %arg2[%c0_14, %c13], %12 {strides = array<i32>} : memref<8x15xf32, #tpu.memory_space<vmem>>, vector<8x1xf32>,
    %c0_15 = arith.constant 0 : index
    %c0_16 = arith.constant 0 : index
    %14 = vector.load %arg1[%c0_15, %c0_16] : memref<8x8xf32, #tpu.memory_space<vmem>>, vector<8x1xf32>
    %c0_17 = arith.constant 0 : index
    %c14 = arith.constant 14 : index
    %15 = vector.load %arg2[%c0_17, %c14] : memref<8x15xf32, #tpu.memory_space<vmem>>, vector<8x1xf32>
    tpu.vector_store %arg2[%c0_17, %c14], %14 {strides = array<i32>} : memref<8x15xf32, #tpu.memory_space<vmem>>, vector<8x1xf32>,
    return
  }
  func.func @transform_0(%arg0: i32) -> (i32, i32) {
    %c0_i32 = arith.constant 0 : i32
    %c0_i32_0 = arith.constant 0 : i32
    return %arg0, %c0_i32 : i32, i32
  }
  func.func @transform_1(%arg0: i32) -> (i32, i32) {
    %c0_i32 = arith.constant 0 : i32
    %c0_i32_0 = arith.constant 0 : i32
    return %arg0, %c0_i32 : i32, i32
  }
}

</mosaic_0001>

<bundles_post_ra>
// kernel: tpu_custom_call.1
= control target key start
LH: loop header
LB: loop body
LE: loop exit
PB: predicated region body
PF: predicated region fallthrough
CT: control target
= control target key end

     0   :  { %6 = vsyncpa [#allocation3], 0  ;;  %s165_s0 = inlined_call_operand.hbm [shape: f32[8,8], index: 0, kind: input, shape index: {}]   ;;  %s166_s1 = inlined_call_operand.hbm [shape: f32[8,15], index: 1, kind: output, shape index: {}]  }
   0x1   :  { %7 = vsyncpa [#allocation4], 0  ;;  %s13_s8 = sshll.u32 %s165_s0, 4  ;;  %s140_s9 = smov [#allocation2]   ;;  %s14_s8 = int_to_ptr.hbm [resolvable:$true] %s13_s8 }
   0x2   :  { %s15_s10 = sshll.u32 %s140_s9, 4  ;;  %s16_s10 = int_to_ptr.vmem [resolvable:$true] %s15_s10 }
   0x3   :  { %18 = dma.hbm_to_vmem [thread:$0]  %s14_s8, 128, %s16_s10, [#allocation3]  }
   0x4   :  { %136 = dma.done.wait [#allocation3], 128  }
   0x5   :  { %137 = vsyncadd [#allocation3], 4294967168  ;;  %v23_v0 = vld [vmem:[#allocation2] sm:$0xff]  ;;  %s141_s11 = smov 2   ;;  %s142_s12 = smov 6   ;;  %vm46_vm0 = vcmask 64512  }
   0x6   :  { %25 = vrot.lane.b32.xlu0 %v23_v0, %s141_s11  ;;  %31 = vrot.lane.b32.xlu1 %v23_v0, %s142_s12  ;;  %s143_s13 = smov 10   ;;  %s144_s14 = smov 4   ;;  %vm48_vm1 = vcmask 72704   ;;  %vm50_vm2 = vcmask 80896   ;;  %vm52_vm3 = vcmask 89088   ;;  %vm54_vm4 = vcmask 97280  }
   0x7   :  { %37 = vrot.lane.b32.xlu2 %v23_v0, %s143_s13  ;;  %s145_s15 = smov 8   ;;  %s146_s16 = smov 12   ;;  %vm56_vm5 = vcmask 105472   ;;  %vm58_vm6 = vcmask 113664   ;;  %vm60_vm7 = vcmask 121856  }
   0x8   :  { %s147_s0 = smov 14   ;;  %s148_s17 = smov [#allocation5]  }
   0x9   :  { %s67_s18 = sshll.u32 %s148_s17, 4  ;;  %s69_s21 = sshll.u32 %s166_s1, 4  ;;  %s68_s18 = int_to_ptr.vmem [resolvable:$true] %s67_s18  ;;  %s70_s21 = int_to_ptr.hbm [resolvable:$true] %s69_s21 }
   0xe   :  { %28 = vrot.lane.b32.xlu0 %v23_v0, %s144_s14  ;;  %34 = vrot.lane.b32.xlu1 %v23_v0, %s145_s15 }
   0xf   :  { %40 = vrot.lane.b32.xlu2 %v23_v0, %s146_s16 }
  0x16   :  { %43 = vrot.lane.b32.xlu0 %v23_v0, %s147_s0 }
  0x61   :  { %v38_v3 = vpop.permute.xlu2 %37 }
  0x69   :  { %v41_v10 = vpop.permute.xlu2 %40 }
  0x78   :  { %v26_v1 = vpop.permute.xlu0 %25  ;;  %v32_v2 = vpop.permute.xlu1 %31 }
  0x79   :  { %v47_v4 = vsel %vm46_vm0, %v23_v0, %v26_v1 }
  0x80   :  { %v29_v5 = vpop.permute.xlu0 %28  ;;  %v35_v6 = vpop.permute.xlu1 %34 }
  0x81   :  { %v49_v7 = vsel %vm48_vm1, %v47_v4, %v29_v5 }
  0x82   :  { %v51_v8 = vsel %vm50_vm2, %v49_v7, %v32_v2 }
  0x83   :  { %v53_v9 = vsel %vm52_vm3, %v51_v8, %v35_v6 }
  0x84   :  { %v55_v11 = vsel %vm54_vm4, %v53_v9, %v38_v3 }
  0x85   :  { %v57_v12 = vsel %vm56_vm5, %v55_v11, %v41_v10 }
  0x88   :  { %v44_v13 = vpop.permute.xlu0 %43 }
  0x89   :  { %v59_v14 = vsel %vm58_vm6, %v57_v12, %v44_v13 }
  0x8a   :  { %61 = vst.msk [vmem:[#allocation5] sm:$0xff] %vm60_vm7, %v59_v14 }
  0x8b   :  { %72 = dma.vmem_to_hbm [thread:$0]  %s68_s18, 128, %s70_s21, [#allocation4]  }
  0x8c   :  { %138 = dma.done.wait [#allocation4], 128  }
  0x8d   :  { %139 = vsyncadd [#allocation4], 4294967168 }
  0x8e   :  { %77 = vsyncpa [#allocation3], 1 }
  0x8f   :  { %78 = vsyncpa [#allocation4], 1 }

// kernel: tpu_custom_call.1
= control target key start
LH: loop header
LB: loop body
LE: loop exit
PB: predicated region body
PF: predicated region fallthrough
CT: control target
= control target key end

     0   :  { %6 = vsyncpa [#allocation3], 0  ;;  %s178_s0 = inlined_call_operand.hbm [shape: f32[8,8], index: 0, kind: input, shape index: {}]   ;;  %s179_s1 = inlined_call_operand.hbm [shape: f32[8,15], index: 1, kind: output, shape index: {}]  }
   0x1   :  { %7 = vsyncpa [#allocation4], 0  ;;  %s13_s8 = sshll.u32 %s178_s0, 4  ;;  %s153_s9 = smov [#allocation2]   ;;  %s14_s8 = int_to_ptr.hbm [resolvable:$true] %s13_s8 }
   0x2   :  { %s15_s10 = sshll.u32 %s153_s9, 4  ;;  %s16_s10 = int_to_ptr.vmem [resolvable:$true] %s15_s10 }
   0x3   :  { %18 = dma.hbm_to_vmem [thread:$0]  %s14_s8, 128, %s16_s10, [#allocation3]  }
   0x4   :  { %149 = dma.done.wait [#allocation3], 128  }
   0x5   :  { %150 = vsyncadd [#allocation3], 4294967168  ;;  %vm24_vm0 = vcmask 64512   ;;  %v26_v0 = vld [vmem:[#allocation2] sm:$0xff]  ;;  %s154_s11 = smov 2   ;;  %s155_s12 = smov 6  }
   0x6   :  { %28 = vrot.lane.b32.xlu0 %v26_v0, %s154_s11  ;;  %42 = vrot.lane.b32.xlu1 %v26_v0, %s155_s12  ;;  %25 = vst.msk [vmem:[#allocation5] sm:$0xff] %vm24_vm0, %v26_v0  ;;  %s156_s13 = smov 10   ;;  %s157_s14 = smov 4   ;;  %vm31_vm1 = vcmask 72768   ;;  %vm38_vm2 = vcmask 80968   ;;  %vm45_vm3 = vcmask 89168  }
   0x7   :  { %56 = vrot.lane.b32.xlu2 %v26_v0, %s156_s13  ;;  %s158_s15 = smov 8   ;;  %s159_s0 = smov 12   ;;  %vm52_vm4 = vcmask 97368   ;;  %vm59_vm5 = vcmask 105568   ;;  %vm66_vm6 = vcmask 113768   ;;  %vm73_vm7 = vcmask 121968  }
   0x8   :  { %s160_s16 = smov 14   ;;  %s161_s17 = smov [#allocation5]  }
   0x9   :  { %s80_s18 = sshll.u32 %s161_s17, 4  ;;  %s82_s21 = sshll.u32 %s179_s1, 4  ;;  %s81_s18 = int_to_ptr.vmem [resolvable:$true] %s80_s18  ;;  %s83_s21 = int_to_ptr.hbm [resolvable:$true] %s82_s21 }
   0xe   :  { %35 = vrot.lane.b32.xlu0 %v26_v0, %s157_s14  ;;  %49 = vrot.lane.b32.xlu1 %v26_v0, %s158_s15 }
   0xf   :  { %63 = vrot.lane.b32.xlu2 %v26_v0, %s159_s0 }
  0x16   :  { %70 = vrot.lane.b32.xlu0 %v26_v0, %s160_s16 }
  0x61   :  { %v57_v1 = vpop.permute.xlu2 %56 }
  0x69   :  { %v64_v6 = vpop.permute.xlu2 %63 }
  0x78   :  { %v29_v2 = vpop.permute.xlu0 %28  ;;  %v43_v3 = vpop.permute.xlu1 %42 }
  0x79   :  { %32 = vst.msk [vmem:[#allocation5] sm:$0xff] %vm31_vm1, %v29_v2 }
  0x80   :  { %v36_v4 = vpop.permute.xlu0 %35  ;;  %v50_v5 = vpop.permute.xlu1 %49 }
  0x81   :  { %39 = vst.msk [vmem:[#allocation5] sm:$0xff] %vm38_vm2, %v36_v4 }
  0x82   :  { %46 = vst.msk [vmem:[#allocation5] sm:$0xff] %vm45_vm3, %v43_v3 }
  0x83   :  { %53 = vst.msk [vmem:[#allocation5] sm:$0xff] %vm52_vm4, %v50_v5 }
  0x84   :  { %60 = vst.msk [vmem:[#allocation5] sm:$0xff] %vm59_vm5, %v57_v1 }
  0x85   :  { %67 = vst.msk [vmem:[#allocation5] sm:$0xff] %vm66_vm6, %v64_v6 }
  0x88   :  { %v71_v7 = vpop.permute.xlu0 %70 }
  0x89   :  { %74 = vst.msk [vmem:[#allocation5] sm:$0xff] %vm73_vm7, %v71_v7 }
  0x8a   :  { %85 = dma.vmem_to_hbm [thread:$0]  %s81_s18, 128, %s83_s21, [#allocation4]  }
  0x8b   :  { %151 = dma.done.wait [#allocation4], 128  }
  0x8c   :  { %152 = vsyncadd [#allocation4], 4294967168 }
  0x8d   :  { %90 = vsyncpa [#allocation3], 1 }
  0x8e   :  { %91 = vsyncpa [#allocation4], 1 }

</bundles_post_ra>
